<compile_context>
chip_gen: v7x
topology: tpu7x:2x2x1
jax: 0.10.0
libtpu: 0.0.40
codegen_flags: <defaults>
</compile_context>

<pallas_src>
import numpy as np
import jax
import jax.numpy as jnp
from jax.experimental import pallas as pl
from jax.experimental.pallas import tpu as pltpu


_LANE = 128

# mask-id encoding for the 2-modality fused kernel
_MASK_M0_ONLY = 0   # [True,  False] -> projectors[0]
_MASK_M1_ONLY = 1   # [False, True ] -> projectors[1]
_MASK_BOTH = 2      # [True,  True ] -> head_projector on concat


def _round_up(n, m):
    return ((n + m - 1) // m) * m


def _pad_last(a, to):
    pad = to - a.shape[-1]
    if pad == 0:
        return a
    cfg = [(0, 0)] * (a.ndim - 1) + [(0, pad)]
    return jnp.pad(a, cfg)


def _vmem_limit_bytes():
    # Re-derive per generation: ~75% of physical VMEM (=> ~48 MiB on v7x's
    # 64 MiB, ~96 MiB on v5e/v6e's 128 MiB), capped at 100 MiB.
    try:
        cap = int(pltpu.get_tpu_info().vmem_capacity_bytes)
    except Exception:
        cap = 64 * 1024 * 1024
    return min(int(cap * 3 // 4), 100 * 1024 * 1024)


def _pick_batch_tile(B, cap=256):
    # Full batch when small; otherwise 256 rows (v6e/v7x MXU M dimension).
    # Grids use pl.cdiv, so a ragged last batch tile is handled with masked
    # output stores (rows depend only on themselves -> garbage rows discarded).
    return B if B <= cap else cap


def _pick_k_tile(Din, cap):
    if Din <= cap:
        return Din
    for t in (1024, 768, 512, 384, 256, 128):
        if t <= cap and Din % t == 0:
            return t
    # TODO(synk): pad/mask ragged K blocks for awkward Din instead of falling
    # back to a single whole-Din weight block.
    return Din


def _invariant_spec(block_shape, index_map):
    """BlockSpec for a grid-invariant input: single-buffer it (no point
    double-buffering a block whose index never changes)."""
    try:
        return pl.BlockSpec(block_shape, index_map, pipeline_mode=pl.Buffered(1))
    except (TypeError, AttributeError):   # older jax without pipeline_mode
        return pl.BlockSpec(block_shape, index_map)


# ----------------------------- Pallas kernels ------------------------------ #

def _linear_kernel(x_ref, wt_ref, b_ref, o_ref, acc_ref):
    # K-tiled: acc += x[:, kblk] @ wt[kblk, :] in f32; bias + store on last k.
    k = pl.program_id(1)

    @pl.when(k == 0)
    def _():
        acc_ref[...] = jnp.zeros_like(acc_ref)

    acc_ref[...] += jnp.dot(x_ref[...], wt_ref[...],
                            preferred_element_type=jnp.float32)

    @pl.when(k == pl.num_programs(1) - 1)
    def _():
        o_ref[...] = (acc_ref[...] + b_ref[...]).astype(o_ref.dtype)


def _fused_mask_kernel(tbl_ref, x0_ref, x1_ref, w0_ref, w1_ref, b_ref, o_ref):
    # Fused "select projector + concat + linear" for one (batch-tile, mask)
    # grid cell:
    #   o = b[mask] (+ x0 @ W0[mask] if modality-0 active)
    #               (+ x1 @ W1[mask] if modality-1 active)
    # tbl_ref (SMEM, scalar-prefetched) columns:
    #   0: W0 slab id, 1: W1 slab id, 2: bias slab id, 3: use_x0, 4: use_x1
    # Columns 0-2 drive the index_maps; 3-4 gate the dead matmuls for
    # single-modality masks.  The concatenated activation never touches HBM.
    m = pl.program_id(1)
    o_ref[...] = jnp.broadcast_to(b_ref[...], o_ref.shape).astype(o_ref.dtype)

    @pl.when(tbl_ref[m, 3] == 1)
    def _():
        o_ref[...] += jnp.dot(x0_ref[...], w0_ref[...],
                              preferred_element_type=jnp.float32)

    @pl.when(tbl_ref[m, 4] == 1)
    def _():
        o_ref[...] += jnp.dot(x1_ref[...], w1_ref[...],
                              preferred_element_type=jnp.float32)


# ----------------------------- Pallas wrappers ------------------------------ #

def pallas_linear(x, wt, b, *, max_k_tile=1024):
    """y = x @ wt + b.  wt: [Din, Dp] pre-transposed, lane-padded, bf16."""
    B, Din = x.shape
    Dp = wt.shape[1]
    tm = _pick_batch_tile(B)
    tk = _pick_k_tile(Din, max_k_tile)
    nb = pl.cdiv(B, tm)
    nk = pl.cdiv(Din, tk)

    x = x.astype(wt.dtype)   # bf16 MXU operands (accumulation stays f32)

    if nk == 1:
        wt_spec = _invariant_spec((tk, Dp), lambda i, k: (k, 0))
    else:
        wt_spec = pl.BlockSpec((tk, Dp), lambda i, k: (k, 0))

    cost = pl.CostEstimate(
        flops=2 * B * Din * Dp,
        transcendentals=0,
        bytes_accessed=int(x.size * x.dtype.itemsize
                           + wt.size * wt.dtype.itemsize
                           + b.size * 4 + B * Dp * 4),
    )
    return pl.pallas_call(
        _linear_kernel,
        out_shape=jax.ShapeDtypeStruct((B, Dp), jnp.float32),
        grid_spec=pltpu.PrefetchScalarGridSpec(
            num_scalar_prefetch=0,
            grid=(nb, nk),                  # K reduction last ("arbitrary")
            in_specs=[
                pl.BlockSpec((tm, tk), lambda i, k: (i, k)),
                wt_spec,
                _invariant_spec((1, Dp), lambda i, k: (0, 0)),   # resident bias
            ],
            out_specs=pl.BlockSpec((tm, Dp), lambda i, k: (i, 0)),
            scratch_shapes=[pltpu.VMEM((tm, Dp), jnp.float32)],
        ),
        compiler_params=pltpu.CompilerParams(
            dimension_semantics=("parallel", "arbitrary"),
            vmem_limit_bytes=_vmem_limit_bytes(),
        ),
        cost_estimate=cost,
    )(x, wt, b)


def pallas_fused_masks(tbl, x0, x1, w0_all, w1_all, b_all):
    """One pallas_call computing, for every mask row m of `tbl`:
         out[m] = b_all[tbl[m,2]] (+ x0 @ w0_all[tbl[m,0]] if tbl[m,3])
                                  (+ x1 @ w1_all[tbl[m,1]] if tbl[m,4])
    Grid is (batch_tiles, masks) with batch OUTER: x0/x1 tiles are the
    VMEM-resident stream (fetched once per batch tile, reused across all
    masks); the small per-mask bf16 weight slabs are the streamed operand.
    """
    M = int(tbl.shape[0])
    B, d0 = x0.shape
    _, d1 = x1.shape
    Dp = w0_all.shape[-1]
    tm = _pick_batch_tile(B)
    nb = pl.cdiv(B, tm)

    x0 = x0.astype(w0_all.dtype)
    x1 = x1.astype(w1_all.dtype)

    wbytes = int((w0_all.size + w1_all.size) * w0_all.dtype.itemsize)
    cost = pl.CostEstimate(
        flops=2 * M * B * (d0 + d1) * Dp,
        transcendentals=0,
        bytes_accessed=int((x0.size + x1.size) * x0.dtype.itemsize
                           + nb * wbytes + b_all.size * 4 + M * B * Dp * 4),
    )
    return pl.pallas_call(
        _fused_mask_kernel,
        out_shape=jax.ShapeDtypeStruct((M, B, Dp), jnp.float32),
        grid_spec=pltpu.PrefetchScalarGridSpec(
            num_scalar_prefetch=1,
            grid=(nb, M),                   # batch outer, masks inner
            in_specs=[
                pl.BlockSpec((tm, d0), lambda i, m, t: (i, 0)),
                pl.BlockSpec((tm, d1), lambda i, m, t: (i, 0)),
                pl.BlockSpec((None, d0, Dp), lambda i, m, t: (t[m, 0], 0, 0)),
                pl.BlockSpec((None, d1, Dp), lambda i, m, t: (t[m, 1], 0, 0)),
                pl.BlockSpec((None, 1, Dp), lambda i, m, t: (t[m, 2], 0, 0)),
            ],
            out_specs=pl.BlockSpec((None, tm, Dp), lambda i, m, t: (m, i, 0)),
        ),
        compiler_params=pltpu.CompilerParams(
            # Batch is the outer "parallel" axis -> v7x megacore shards batch
            # tiles (a 3-long mask axis would load-balance 2+1); the mask axis
            # is the sequential inner loop over which x stays VMEM-resident.
            dimension_semantics=("parallel", "arbitrary"),
            vmem_limit_bytes=_vmem_limit_bytes(),
        ),
        cost_estimate=cost,
    )(tbl, x0, x1, w0_all, w1_all, b_all)


# --------------------------- LinearFusion (JAX) ---------------------------- #

class LinearFusionPallas:
    """JAX/Pallas re-implementation of LinearFusion.

    Encoders are identity here; the projectors / head_projector Linears run in
    Pallas kernels.
    """
    # TODO(synk): arbitrary per-modality encoder nn.Modules have no generic
    # Pallas equivalent; identity encoders are used (passthrough config).

    # table row per mask id: [w0 slab, w1 slab, bias slab, use_x0, use_x1]
    _MASK_ROWS = {
        _MASK_M0_ONLY: (0, 0, 0, 1, 0),
        _MASK_M1_ONLY: (0, 0, 1, 0, 1),
        _MASK_BOTH:    (1, 1, 2, 1, 1),
    }

    def __init__(self, mod_dims, embed_dim=512, key=None,
                 compute_dtype=jnp.bfloat16):
        self.mod_dims = list(mod_dims)
        self.embed_dim = int(embed_dim)
        self.embed_dim_padded = _round_up(self.embed_dim, _LANE)
        self.num_modalities = len(self.mod_dims)
        self.compute_dtype = compute_dtype
        if key is None:
            key = jax.random.PRNGKey(0)

        def init_linear(k, din, dout):
            kw, kb = jax.random.split(k)
            bound = 1.0 / np.sqrt(din)     # PyTorch nn.Linear default init
            w = jax.random.uniform(kw, (dout, din), jnp.float32, -bound, bound)
            b = jax.random.uniform(kb, (dout,), jnp.float32, -bound, bound)
            return w, b

        Dp = self.embed_dim_padded
        keys = jax.random.split(key, self.num_modalities + 1)

        self._raw = {}
        self.proj_wt, self.proj_b = [], []
        for i, d in enumerate(self.mod_dims):
            w, b = init_linear(keys[i], d, self.embed_dim)
            self._raw[f"proj{i}"] = (w, b)
            # pre-transpose + lane-pad + bf16 ONCE (static parameters)
            self.proj_wt.append(_pad_last(w.T, Dp).astype(compute_dtype))   # [d, Dp]
            self.proj_b.append(_pad_last(b.reshape(1, -1), Dp))             # [1, Dp] f32

        sum_d = int(sum(self.mod_dims))
        wh, bh = init_linear(keys[-1], sum_d, self.embed_dim)
        self._raw["head"] = (wh, bh)
        self.head_wt = _pad_last(wh.T, Dp).astype(compute_dtype)            # [sum_d, Dp]
        self.head_b = _pad_last(bh.reshape(1, -1), Dp)                      # [1, Dp] f32

        # Pre-stacked per-mask weight slabs for the 2-modality fused kernel.
        # Slab 0 = single-modality projector, slab 1 = head-projector rows.
        # (No zero slabs: inactive modalities skip their matmul via pl.when.)
        if self.num_modalities == 2:
            d0, _ = self.mod_dims
            self.w0_all = jnp.stack([self.proj_wt[0], self.head_wt[:d0]])   # [2, d0, Dp]
            self.w1_all = jnp.stack([self.proj_wt[1], self.head_wt[d0:]])   # [2, d1, Dp]
            self.b_all = jnp.stack([self.proj_b[0], self.proj_b[1], self.head_b])  # [3,1,Dp]

    # encoders: identity (arbitrary nn.Module in the PyTorch original)
    def _encode(self, xi):
        return xi

    def _mask_table(self, mask_ids):
        return jnp.asarray([self._MASK_ROWS[m] for m in mask_ids], jnp.int32)

    def _unpad(self, y):
        # TODO(synk): when embed_dim is not a multiple of 128 this slice
        # re-introduces lane-masked stores in XLA; prefer a 128-multiple
        # embed_dim (as in the demo) or consume the padded output downstream.
        return y if y.shape[-1] == self.embed_dim else y[..., : self.embed_dim]

    # ---- single-mask path -------------------------------------------------- #
    def get_common_embedding(self, z, mask_modalities):
        n_active = int(np.sum(mask_modalities))
        if n_active == 1:
            idx = int(np.nonzero(mask_modalities)[0][0])
            # z may be the full modality list (list-of-masks path) or the
            # filtered list with just the single active modality.
            zi = z[idx] if len(z) == self.num_modalities else z[0]
            return self._unpad(pallas_linear(zi, self.proj_wt[idx], self.proj_b[idx]))
        elif n_active == 2:
            if self.num_modalities == 2 and len(z) == 2:
                tbl = self._mask_table([_MASK_BOTH])
                out = pallas_fused_masks(tbl, z[0], z[1],
                                         self.w0_all, self.w1_all, self.b_all)
                return self._unpad(out[0])
            # generic fallback (rare): concat then head projector
            zc = jnp.concatenate(z, axis=-1)
            return self._unpad(pallas_linear(zc, self.head_wt, self.head_b))
        raise NotImplementedError()

    # ---- batched list-of-masks path (single pallas_call) ------------------- #
    def _batched_common_embeddings(self, z, list_mask_mod):
        if self.num_modalities != 2:
            return [self.get_common_embedding(z, mm) for mm in list_mask_mod]
        ids = []
        for mask in list_mask_mod:
            n = int(np.sum(mask))
            if n == 1:
                ids.append(_MASK_M0_ONLY if mask[0] else _MASK_M1_ONLY)
            elif n == 2:
                ids.append(_MASK_BOTH)
            else:
                raise NotImplementedError()
        tbl = self._mask_table(ids)
        out = pallas_fused_masks(tbl, z[0], z[1],
                                 self.w0_all, self.w1_all, self.b_all)
        return [self._unpad(out[m]) for m in range(len(list_mask_mod))]

    def forward(self, x, mask_modalities=None):
        list_mask_mod = None
        if mask_modalities is None:
            mask_modalities = self.num_modalities * [True]
        elif (isinstance(mask_modalities, list) and len(mask_modalities) > 0
              and isinstance(mask_modalities[0], list)):
            list_mask_mod = mask_modalities
            mask_modalities = self.num_modalities * [True]
        assert len(mask_modalities) == self.num_modalities
        num_modalities = int(sum(mask_modalities))
        assert len(x) == num_modalities
        Z = [self._encode(xi) for xi in x]
        if list_mask_mod is not None:
            return self._batched_common_embeddings(Z, list_mask_mod)
        return self.get_common_embedding(Z, mask_modalities)

    __call__ = forward


# --------------------------------- main ------------------------------------ #

if __name__ == "__main__":
    key = jax.random.PRNGKey(0)
    k_model, k_x0, k_x1, k_xk, k_wk = jax.random.split(key, 5)

    B = 8
    mod_dims = [32, 48]
    embed_dim = 128   # lane-dense: padded Dp == embed_dim, no output slice

    model = LinearFusionPallas(mod_dims, embed_dim=embed_dim, key=k_model)

    x0 = jax.random.normal(k_x0, (B, mod_dims[0]), jnp.float32)
    x1 = jax.random.normal(k_x1, (B, mod_dims[1]), jnp.float32)

    def bf16(a):  # same rounding the kernel applies to its MXU operands
        return a.astype(jnp.bfloat16).astype(jnp.float32)

    w0, b0 = model._raw["proj0"]
    w1, b1 = model._raw["proj1"]
    wh, bh = model._raw["head"]
    ref0 = bf16(x0) @ bf16(w0).T + b0
    ref1 = bf16(x1) @ bf16(w1).T + b1
    ref_head = jnp.concatenate([bf16(x0), bf16(x1)], -1) @ bf16(wh).T + bh
    ref_head_f32 = jnp.concatenate([x0, x1], -1) @ wh.T + bh

    # ---- both modalities -> fused concat+head_projector kernel -------------- #
    out = jax.block_until_ready(model([x0, x1]))
    assert out.shape == (B, embed_dim)
    assert jnp.allclose(out, ref_head, atol=1e-4, rtol=1e-4)        # exact path
    assert jnp.allclose(out, ref_head_f32, atol=5e-2, rtol=5e-2)    # bf16 vs f32

    # ---- list-of-masks -> ONE batched pallas_call over 3 masks -------------- #
    outs = model([x0, x1],
                 mask_modalities=[[True, False], [False, True], [True, True]])
    outs = [jax.block_until_ready(o) for o in outs]
    assert jnp.allclose(outs[0], ref0, atol=1e-4, rtol=1e-4)
    assert jnp.allclose(outs[1], ref1, atol=1e-4, rtol=1e-4)
    assert jnp.allclose(outs[2], ref_head, atol=1e-4, rtol=1e-4)

    # ---- single-level mask, single modality (n_active == 1 path) ------------ #
    out_single = jax.block_until_ready(model([x1], mask_modalities=[False, True]))
    assert out_single.shape == (B, embed_dim)
    assert jnp.allclose(out_single, ref1, atol=1e-4, rtol=1e-4)

    # ---- K-tiled pallas_linear path (small shapes, forced K split) ---------- #
    Din = 512
    xk = jax.random.normal(k_xk, (B, Din), jnp.float32)
    wk = jax.random.uniform(k_wk, (embed_dim, Din), jnp.float32, -0.05, 0.05)
    bk = jnp.zeros((1, embed_dim), jnp.float32)
    wk_t = _pad_last(wk.T, model.embed_dim_padded).astype(jnp.bfloat16)
    yk = jax.block_until_ready(pallas_linear(xk, wk_t, bk, max_k_tile=128))
    ref_k = bf16(xk) @ bf16(wk).T
    assert jnp.allclose(yk[:, :embed_dim], ref_k, atol=1e-3, rtol=1e-3)

    print("KERNEL_OK")
</pallas_src>

<mosaic_0001>
module attributes {stable_mosaic.version = 11 : i64} {
  func.func @_fused_mask_kernel(%arg0: i32, %arg1: i32, %arg2: memref<1x5xi32, #tpu.memory_space<smem>>, %arg3: memref<8x32xbf16, #tpu.memory_space<vmem>>, %arg4: memref<8x48xbf16, #tpu.memory_space<vmem>>, %arg5: memref<1x32x128xbf16, #tpu.memory_space<vmem>>, %arg6: memref<1x48x128xbf16, #tpu.memory_space<vmem>>, %arg7: memref<1x1x128xf32, #tpu.memory_space<vmem>>, %arg8: memref<1x8x128xf32, #tpu.memory_space<vmem>>) attributes {dimension_semantics = [#tpu.dimension_semantics<parallel>, #tpu.dimension_semantics<arbitrary>], iteration_bounds = array<i64: 1, 1>, scalar_prefetch = 1 : i64, scratch_operands = 0 : i64, tpu.core_type = #tpu.core_type<tc>, window_params = [{transform_indices = @transform_0, window_bounds = array<i64: 8, 32>}, {transform_indices = @transform_1, window_bounds = array<i64: 8, 48>}, {transform_indices = @transform_2, window_bounds = array<i64: 1, 32, 128>}, {transform_indices = @transform_3, window_bounds = array<i64: 1, 48, 128>}, {transform_indices = @transform_4, window_bounds = array<i64: 1, 1, 128>}, {transform_indices = @transform_5, window_bounds = array<i64: 1, 8, 128>}]} {
    %c0 = arith.constant 0 : index
    %c0_0 = arith.constant 0 : index
    %c0_1 = arith.constant 0 : index
    %0 = vector.load %arg7[%c0, %c0_0, %c0_1] : memref<1x1x128xf32, #tpu.memory_space<vmem>>, vector<1x1x128xf32>
    %1 = vector.shape_cast %0 : vector<1x1x128xf32> to vector<1x128xf32>
    %2 = vector.shape_cast %1 : vector<1x128xf32> to vector<1x128xf32>
    %3 = vector.broadcast %2 : vector<1x128xf32> to vector<8x128xf32>
    %c0_2 = arith.constant 0 : index
    %c0_3 = arith.constant 0 : index
    %c0_4 = arith.constant 0 : index
    %4 = vector.load %arg8[%c0_2, %c0_3, %c0_4] : memref<1x8x128xf32, #tpu.memory_space<vmem>>, vector<1x8x128xf32>
    %5 = vector.shape_cast %4 : vector<1x8x128xf32> to vector<8x128xf32>
    %6 = vector.shape_cast %3 : vector<8x128xf32> to vector<1x8x128xf32>
    tpu.vector_store %arg8[%c0_2, %c0_3, %c0_4], %6 {strides = array<i32>} : memref<1x8x128xf32, #tpu.memory_space<vmem>>, vector<1x8x128xf32>,
    %7 = arith.index_cast %arg1 : i32 to index
    %c3 = arith.constant 3 : index
    %8 = memref.load %arg2[%7, %c3] : memref<1x5xi32, #tpu.memory_space<smem>>
    %c1_i32 = arith.constant 1 : i32
    %9 = arith.cmpi eq, %8, %c1_i32 : i32
    %10 = arith.extui %9 : i1 to i32
    %c0_i32 = arith.constant 0 : i32
    %11 = arith.cmpi ne, %10, %c0_i32 : i32
    scf.if %11 {
      %c0_7 = arith.constant 0 : index
      %c0_8 = arith.constant 0 : index
      %c0_9 = arith.constant 0 : index
      %17 = vector.load %arg8[%c0_7, %c0_8, %c0_9] : memref<1x8x128xf32, #tpu.memory_space<vmem>>, vector<1x8x128xf32>
      %18 = vector.shape_cast %17 : vector<1x8x128xf32> to vector<8x128xf32>
      %c0_10 = arith.constant 0 : index
      %c0_11 = arith.constant 0 : index
      %19 = vector.load %arg3[%c0_10, %c0_11] : memref<8x32xbf16, #tpu.memory_space<vmem>>, vector<8x32xbf16>
      %c0_12 = arith.constant 0 : index
      %c0_13 = arith.constant 0 : index
      %c0_14 = arith.constant 0 : index
      %20 = vector.load %arg5[%c0_12, %c0_13, %c0_14] : memref<1x32x128xbf16, #tpu.memory_space<vmem>>, vector<1x32x128xbf16>
      %21 = vector.shape_cast %20 : vector<1x32x128xbf16> to vector<32x128xbf16>
      %cst = arith.constant dense<0.000000e+00> : vector<8x128xf32>
      %22 = tpu.matmul %19, %21, %cst {dimension_numbers = #tpu.dot_dimension_numbers<[1], [0], [0], [1], [0, 0, 1, 1], [], []>} : vector<8x32xbf16>, vector<32x128xbf16>, vector<8x128xf32> -> vector<8x128xf32>
      %23 = arith.addf %18, %22 : vector<8x128xf32>
      %c0_15 = arith.constant 0 : index
      %c0_16 = arith.constant 0 : index
      %c0_17 = arith.constant 0 : index
      %24 = vector.load %arg8[%c0_15, %c0_16, %c0_17] : memref<1x8x128xf32, #tpu.memory_space<vmem>>, vector<1x8x128xf32>
      %25 = vector.shape_cast %24 : vector<1x8x128xf32> to vector<8x128xf32>
      %26 = vector.shape_cast %23 : vector<8x128xf32> to vector<1x8x128xf32>
      tpu.vector_store %arg8[%c0_15, %c0_16, %c0_17], %26 {strides = array<i32>} : memref<1x8x128xf32, #tpu.memory_space<vmem>>, vector<1x8x128xf32>,
    } else {
    }
    %12 = arith.index_cast %arg1 : i32 to index
    %c4 = arith.constant 4 : index
    %13 = memref.load %arg2[%12, %c4] : memref<1x5xi32, #tpu.memory_space<smem>>
    %c1_i32_5 = arith.constant 1 : i32
    %14 = arith.cmpi eq, %13, %c1_i32_5 : i32
    %15 = arith.extui %14 : i1 to i32
    %c0_i32_6 = arith.constant 0 : i32
    %16 = arith.cmpi ne, %15, %c0_i32_6 : i32
    scf.if %16 {
      %c0_7 = arith.constant 0 : index
      %c0_8 = arith.constant 0 : index
      %c0_9 = arith.constant 0 : index
      %17 = vector.load %arg8[%c0_7, %c0_8, %c0_9] : memref<1x8x128xf32, #tpu.memory_space<vmem>>, vector<1x8x128xf32>
      %18 = vector.shape_cast %17 : vector<1x8x128xf32> to vector<8x128xf32>
      %c0_10 = arith.constant 0 : index
      %c0_11 = arith.constant 0 : index
      %19 = vector.load %arg4[%c0_10, %c0_11] : memref<8x48xbf16, #tpu.memory_space<vmem>>, vector<8x48xbf16>
      %c0_12 = arith.constant 0 : index
      %c0_13 = arith.constant 0 : index
      %c0_14 = arith.constant 0 : index
      %20 = vector.load %arg6[%c0_12, %c0_13, %c0_14] : memref<1x48x128xbf16, #tpu.memory_space<vmem>>, vector<1x48x128xbf16>
      %21 = vector.shape_cast %20 : vector<1x48x128xbf16> to vector<48x128xbf16>
      %cst = arith.constant dense<0.000000e+00> : vector<8x128xf32>
      %22 = tpu.matmul %19, %21, %cst {dimension_numbers = #tpu.dot_dimension_numbers<[1], [0], [0], [1], [0, 0, 1, 1], [], []>} : vector<8x48xbf16>, vector<48x128xbf16>, vector<8x128xf32> -> vector<8x128xf32>
      %23 = arith.addf %18, %22 : vector<8x128xf32>
      %c0_15 = arith.constant 0 : index
      %c0_16 = arith.constant 0 : index
      %c0_17 = arith.constant 0 : index
      %24 = vector.load %arg8[%c0_15, %c0_16, %c0_17] : memref<1x8x128xf32, #tpu.memory_space<vmem>>, vector<1x8x128xf32>
      %25 = vector.shape_cast %24 : vector<1x8x128xf32> to vector<8x128xf32>
      %26 = vector.shape_cast %23 : vector<8x128xf32> to vector<1x8x128xf32>
      tpu.vector_store %arg8[%c0_15, %c0_16, %c0_17], %26 {strides = array<i32>} : memref<1x8x128xf32, #tpu.memory_space<vmem>>, vector<1x8x128xf32>,
    } else {
    }
    return
  }
  func.func @transform_0(%arg0: i32, %arg1: i32, %arg2: memref<1x5xi32, #tpu.memory_space<smem>>) -> (i32, i32) {
    %c0_i32 = arith.constant 0 : i32
    %c0_i32_0 = arith.constant 0 : i32
    return %arg0, %c0_i32 : i32, i32
  }
  func.func @transform_1(%arg0: i32, %arg1: i32, %arg2: memref<1x5xi32, #tpu.memory_space<smem>>) -> (i32, i32) {
    %c0_i32 = arith.constant 0 : i32
    %c0_i32_0 = arith.constant 0 : i32
    return %arg0, %c0_i32 : i32, i32
  }
  func.func @transform_2(%arg0: i32, %arg1: i32, %arg2: memref<1x5xi32, #tpu.memory_space<smem>>) -> (i32, i32, i32) {
    %0 = arith.index_cast %arg1 : i32 to index
    %c0 = arith.constant 0 : index
    %1 = memref.load %arg2[%0, %c0] : memref<1x5xi32, #tpu.memory_space<smem>>
    %c0_i32 = arith.constant 0 : i32
    %c0_i32_0 = arith.constant 0 : i32
    %c0_i32_1 = arith.constant 0 : i32
    return %1, %c0_i32, %c0_i32_0 : i32, i32, i32
  }
  func.func @transform_3(%arg0: i32, %arg1: i32, %arg2: memref<1x5xi32, #tpu.memory_space<smem>>) -> (i32, i32, i32) {
    %0 = arith.index_cast %arg1 : i32 to index
    %c1 = arith.constant 1 : index
    %1 = memref.load %arg2[%0, %c1] : memref<1x5xi32, #tpu.memory_space<smem>>
    %c0_i32 = arith.constant 0 : i32
    %c0_i32_0 = arith.constant 0 : i32
    %c0_i32_1 = arith.constant 0 : i32
    return %1, %c0_i32, %c0_i32_0 : i32, i32, i32
  }
  func.func @transform_4(%arg0: i32, %arg1: i32, %arg2: memref<1x5xi32, #tpu.memory_space<smem>>) -> (i32, i32, i32) {
    %0 = arith.index_cast %arg1 : i32 to index
    %c2 = arith.constant 2 : index
    %1 = memref.load %arg2[%0, %c2] : memref<1x5xi32, #tpu.memory_space<smem>>
    %c0_i32 = arith.constant 0 : i32
    %c0_i32_0 = arith.constant 0 : i32
    %c0_i32_1 = arith.constant 0 : i32
    return %1, %c0_i32, %c0_i32_0 : i32, i32, i32
  }
  func.func @transform_5(%arg0: i32, %arg1: i32, %arg2: memref<1x5xi32, #tpu.memory_space<smem>>) -> (i32, i32, i32) {
    %c0_i32 = arith.constant 0 : i32
    %c0_i32_0 = arith.constant 0 : i32
    return %arg1, %arg0, %c0_i32 : i32, i32, i32
  }
}

</mosaic_0001>

<bundles_post_ra>
// kernel: tpu_custom_call.1
= control target key start
LH: loop header
LB: loop body
LE: loop exit
PB: predicated region body
PF: predicated region fallthrough
CT: control target
= control target key end

     0   :  { %s581_s0 = inlined_call_operand.hbm [shape: s32[1,5], index: 0, kind: input, shape index: {}]   ;;  %s582_s1 = inlined_call_operand.hbm [shape: bf16[8,32], index: 1, kind: input, shape index: {}]   ;;  %s583_s2 = inlined_call_operand.vmem [shape: bf16[8,48], index: 2, kind: input, shape index: {}]   ;;  %s584_s3 = inlined_call_operand.hbm [shape: bf16[2,32,128], index: 3, kind: input, shape index: {}]   ;;  %s585_s4 = inlined_call_operand.hbm [shape: bf16[2,48,128], index: 4, kind: input, shape index: {}]   ;;  %s586_s5 = inlined_call_operand.vmem [shape: f32[3,1,128], index: 5, kind: input, shape index: {}]   ;;  %s587_s6 = inlined_call_operand.hbm [shape: f32[1,8,128], index: 6, kind: output, shape index: {}]  }
   0x1   :  { %s346_s23 = scalar_lea.hbm %s581_s0, 16 }
   0x2   :  { %p347_p0 = scmp.ne.s32.totalorder %s581_s0, %s346_s23  ;;  %p350_p1 = scmp.lt.u32.totalorder %s346_s23, %s581_s0 }
   0x4   :  { %p352_p2 = pnand %p350_p1, %p347_p0 }
   0x6   :  { %355 = shalt.err (!%p352_p2)  }
   0x7   :  { %s456_s28 = smov [#allocation3]  }
   0x8   :  { %12 = dma.hbm_to_smem %s581_s0, 16, %s456_s28, [#allocation2] }
   0x9   :  { %448 = dma.done.wait [#allocation2], 16 }
   0xa   :  { %449 = vsyncadd [#allocation2], 4294967280 }
   0xb   :  { %14 = sfence }
   0xc   :  { %15 = vsyncpa [#allocation5], 0 }
   0xd   :  { %16 = vsyncpa [#allocation8], 0  ;;  %s33_s7 = sld [smem:[#allocation3]] }
   0xe   :  { %17 = vsyncpa [#allocation6], 0  ;;  %s457_s8 = smov [#allocation7]   ;;  %s514_s10 = sld [smem:[#allocation3 + $0x1]] }
   0xf   :  { %s40_s9 = sshll.u32 %s457_s8, 4  ;;  %s458_s11 = smov [#allocation4]   ;;  %s41_s9 = int_to_ptr.vmem [resolvable:$true] %s40_s9 }
  0x10   :  { %s24_s12 = sshll.u32 %s458_s11, 4  ;;  %s459_s16 = smov [#allocation9]   ;;  %s516_s12 = int_to_ptr.vmem [resolvable:$true] %s24_s12 }
  0x11   :  { %s521_s17 = sshll.u32 %s459_s16, 4  ;;  %s358_s21 = scalar_lea.hbm %s584_s3, 512  ;;  %s59_s17 = int_to_ptr.vmem [resolvable:$true] %s521_s17 }
  0x13   :  { %s303_s13 = sshll.u32 %s33_s7, 8 }
  0x14   :  { %s39_s0 = scalar_lea.hbm %s584_s3, %s303_s13 }
  0x15   :  { %s356_s18 = scalar_lea.hbm %s39_s0, 256  ;;  %p359_p4 = scmp.lt.u32.totalorder %s39_s0, %s584_s3 }
  0x16   :  { %p357_p3 = scmp.ne.s32.totalorder %s39_s0, %s356_s18  ;;  %p360_p5 = scmp.lt.u32.totalorder %s358_s21, %s356_s18 }
  0x17   :  { %p362_p7 = scmp.lt.u32.totalorder %s356_s18, %s39_s0 }
  0x18   :  { %p361_p6 = por %p360_p5, %p359_p4 }
  0x1a   :  { %p363_p8 = por %p362_p7, %p361_p6 }
  0x1c   :  { %p364_p9 = pnand %p363_p8, %p357_p3 }
  0x1e   :  { %367 = shalt.err (!%p364_p9)
}
  0x1f   :  { %s368_s24 = scalar_lea.vmem %s41_s9, 256  ;;  %p373_p11 = scmp.lt.s32.totalorder %s41_s9, %s41_s9 }
  0x20   :  { %p369_p10 = scmp.ne.s32.totalorder %s41_s9, %s368_s24  ;;  %p374_p12 = scmp.lt.s32.totalorder %s368_s24, %s368_s24 }
  0x22   :  { %p375_p13 = por %p374_p12, %p373_p11 }
  0x24   :  { %p376_p0 = pnand %p375_p13, %p369_p10 }
  0x26   :  { %379 = shalt.err (!%p376_p0)
}
  0x27   :  { %s460_s25 = smov 64   ;;  %s461_s26 = smov 4  }
  0x28   :  { %46 = dma.hbm_to_vmem [thread:$0]  %s39_s0, 256, %s41_s9, [#allocation8], %s460_s25, %s460_s25, %s461_s26  }
  0x29   :  { %s380_s28 = scalar_lea.hbm %s582_s1, 64 }
  0x2a   :  { %p381_p1 = scmp.ne.s32.totalorder %s582_s1, %s380_s28  ;;  %p384_p2 = scmp.lt.u32.totalorder %s380_s28, %s582_s1 }
  0x2c   :  { %p386_p3 = pnand %p384_p2, %p381_p1 }
  0x2e   :  { %389 = shalt.err (!%p386_p3)
}
  0x2f   :  { %s390_s11 = scalar_lea.vmem %s516_s12, 64  ;;  %p395_p5 = scmp.lt.s32.totalorder %s516_s12, %s516_s12 }
  0x30   :  { %p391_p4 = scmp.ne.s32.totalorder %s516_s12, %s390_s11  ;;  %p396_p6 = scmp.lt.s32.totalorder %s390_s11, %s390_s11 }
  0x32   :  { %p397_p7 = por %p396_p6, %p395_p5 }
  0x34   :  { %p398_p8 = pnand %p397_p7, %p391_p4 }
  0x36   :  { %401 = shalt.err (!%p398_p8)
}
  0x37   :  { %27 = dma.hbm_to_vmem [thread:$0]  %s582_s1, 64, %s516_s12, [#allocation5]  }
  0x38   :  { %s329_s14 = smul.u32 384, %s514_s10  ;;  %s404_s21 = scalar_lea.hbm %s585_s4, 768 }
  0x3a   :  { %s57_s16 = scalar_lea.hbm %s585_s4, %s329_s14 }
  0x3b   :  { %s402_s18 = scalar_lea.hbm %s57_s16, 384  ;;  %p405_p10 = scmp.lt.u32.totalorder %s57_s16, %s585_s4 }
  0x3c   :  { %p403_p9 = scmp.ne.s32.totalorder %s57_s16, %s402_s18  ;;  %p406_p11 = scmp.lt.u32.totalorder %s404_s21, %s402_s18 }
  0x3d   :  { %p408_p13 = scmp.lt.u32.totalorder %s402_s18, %s57_s16 }
  0x3e   :  { %p407_p12 = por %p406_p11, %p405_p10 }
  0x40   :  { %p409_p0 = por %p408_p13, %p407_p12 }
  0x42   :  { %p410_p1 = pnand %p409_p0, %p403_p9 }
  0x44   :  { %413 = shalt.err (!%p410_p1)
}
  0x45   :  { %s414_s1 = scalar_lea.vmem %s59_s17, 384  ;;  %p419_p3 = scmp.lt.s32.totalorder %s59_s17, %s59_s17 }
  0x46   :  { %p415_p2 = scmp.ne.s32.totalorder %s59_s17, %s414_s1  ;;  %p420_p4 = scmp.lt.s32.totalorder %s414_s1, %s414_s1 }
  0x48   :  { %p421_p5 = por %p420_p4, %p419_p3 }
  0x4a   :  { %p422_p6 = pnand %p421_p5, %p415_p2 }
  0x4c   :  { %425 = shalt.err (!%p422_p6)
}
  0x4d   :  { %64 = dma.hbm_to_vmem [thread:$0]  %s57_s16, 384, %s59_s17, [#allocation8], %s460_s25, %s460_s25, %s461_s26  }
  0x4e   :  { %450 = dma.done.wait [#allocation5], 64  }
  0x4f   :  { %451 = vsyncadd [#allocation5], 4294967232 }
  0x50   :  { %452 = dma.done.wait [#allocation8], 640  }
  0x51   :  { %453 = vsyncadd [#allocation8], 4294966656  ;;  %s290_s4 = sld [smem:[#allocation3 + $0x2]]  ;;  %s292_s10 = sld [smem:[#allocation3 + $0x3]] }
  0x57   :  { %p99_p7 = scmp.lt.s32.totalorder %s290_s4, 2  ;;  %p293_p8 = scmp.ne.s32.totalorder %s292_s10, 1 }
  0x58   :  { %v341_v1 = vld [vmem:[#allocation7] sm:$0xff] (!%p293_p8)   ;;  %v462_v2 = vmov (!%p293_p8), 0.0   ;;  %v342_v3 = vld [vmem:[#allocation7 + $0x8] sm:$0xff] (!%p293_p8)   ;;  %vm463_vm0 = vmmov (!%p293_p8), 0   ;;  %v122_v4 = vld [vmem:[#allocation4] sm:$0xf] (!%p293_p8) }
  0x59   :  { %s589_s4 = smov (!%p99_p7, %s290_s4), 2  ;;  %120 = sbr.rel (%p293_p8) target bundleno = 313 (0x139), region = 37 }
  0x5a   :  { %s101_s3 = scalar_lea.vmem %s586_s5, %s589_s4  ;;  %311 = vmatprep.subr.bf16.mxu0 (!%p293_p8), %v462_v2  ;;  %315 = vmatprep.mubr.msk.bf16.mxu0 (!%p293_p8), %vm463_vm0, %v462_v2  ;;  %vm139_vm1 = vcmask (!%p293_p8), 261120  }
  0x5b   :  { %v291_v0 = vld [vmem:[%s101_s3] ss:$0 sm:$0xff]  ;;  %312 = vmatpush3.bf16.msra.mxu0 (!%p293_p8), %v341_v1 }
  0x5c   :  { %113 = vst [vmem:[#allocation10] sm:$0xff] %v291_v0  ;;  %313 = vmatprep.subr.bf16.mxu0 (!%p293_p8), %v462_v2 }
  0x5f   :  { %314 = vmatpush3.bf16.msra.mxu0 (!%p293_p8), %v342_v3 }
  0x62   :  { %316 = vmatmul.mubr.msk.bf16.vlgmr.msra.gmra.mrb[0].mxu0 %vm139_vm1, %v122_v4 }
  0x63   :  { %v121_v5 = vld [vmem:[#allocation10] sm:$0xff] }
 0x135   :  { %v177_v6 = vpop.f32.mrb[0].mxu0 }
 0x136   :  { %v183_v7 = vadd.f32 %v177_v6, %v121_v5  ;;  %v317_v8 = vpop.f32.mrb[1].mxu0 }
 0x137   :  { %v180_v9 = vpop.f32.mrb[2].mxu0 }
 0x138   :  { %184 = vst [vmem:[#allocation10] sm:$0xff] %v183_v7  ;;  %v318_v10 = vpop.f32.mrb[3].mxu0 }
 0x139 PF:  { %s297_s5 = sld [smem:[#allocation3 + $0x4]] }
 0x13f   :  { %p298_p9 = scmp.ne.s32.totalorder %s297_s5, 1 }
 0x140   :  { %v343_v11 = vld [vmem:[#allocation9] sm:$0xff] (!%p298_p9)   ;;  %v464_v12 = vmov (!%p298_p9), 0.0   ;;  %v344_v13 = vld [vmem:[#allocation9 + $0x8] sm:$0xff] (!%p298_p9)   ;;  %vm465_vm2 = vmmov (!%p298_p9), 0   ;;  %v345_v14 = vld [vmem:[#allocation9 + $0x10] sm:$0xff] (!%p298_p9)   ;;  %vm217_vm3 = vcmask (!%p298_p9), 392192  }
 0x141   :  { %190 = sbr.rel (%p298_p9) target bundleno = 548 (0x224), region = 41  ;;  %319 = vmatprep.subr.bf16.mxu0 (!%p298_p9), %v464_v12  ;;  %325 = vmatprep.mubr.msk.bf16.mxu0 (!%p298_p9), %vm465_vm2, %v464_v12  ;;  %v192_v15 = vld [vmem:[%s583_s2] sm:$0xf] (!%p298_p9) }
 0x142   :  { %320 = vmatpush3.bf16.msra.mxu0 (!%p298_p9), %v343_v11  ;;  %v191_v16 = vld [vmem:[#allocation10] sm:$0xff] (!%p298_p9) }
 0x143   :  { %321 = vmatprep.subr.bf16.mxu0 (!%p298_p9), %v464_v12 }
 0x146   :  { %322 = vmatpush3.bf16.msra.mxu0 (!%p298_p9), %v344_v13 }
 0x147   :  { %323 = vmatprep.subr.bf16.mxu0 (!%p298_p9), %v464_v12 }
 0x14a   :  { %324 = vmatpush3.bf16.msra.mxu0 %v345_v14 }
 0x14d   :  { %326 = vmatmul.mubr.msk.bf16.vlgmr.msra.gmra.mrb[0].mxu0 %vm217_vm3, %v192_v15 }
 0x220   :  { %v255_v17 = vpop.f32.mrb[0].mxu0 }
 0x221   :  { %v261_v18 = vadd.f32 %v255_v17, %v191_v16  ;;  %v327_v19 = vpop.f32.mrb[1].mxu0 }
 0x222   :  { %v258_v20 = vpop.f32.mrb[2].mxu0 }
 0x223   :  { %262 = vst [vmem:[#allocation10] sm:$0xff] %v261_v18  ;;  %v328_v21 = vpop.f32.mrb[3].mxu0 }
 0x224 PF:  { %s466_s26 = smov [#allocation10]  }
 0x225   :  { %s269_s27 = sshll.u32 %s466_s26, 4  ;;  %s270_s27 = int_to_ptr.vmem [resolvable:$true] %s269_s27 }
 0x226   :  { %s426_s28 = scalar_lea.vmem %s270_s27, 128  ;;  %p431_p11 = scmp.lt.s32.totalorder %s270_s27, %s270_s27 }
 0x227   :  { %p427_p10 = scmp.ne.s32.totalorder %s270_s27, %s426_s28  ;;  %p432_p12 = scmp.lt.s32.totalorder %s426_s28, %s426_s28 }
 0x229   :  { %p433_p13 = por %p432_p12, %p431_p11 }
 0x22b   :  { %p434_p0 = pnand %p433_p13, %p427_p10 }
 0x22d   :  { %437 = shalt.err (!%p434_p0)
}
 0x22e   :  { %s438_s30 = scalar_lea.hbm %s587_s6, 128 }
 0x22f   :  { %p439_p1 = scmp.ne.s32.totalorder %s587_s6, %s438_s30  ;;  %p442_p2 = scmp.lt.u32.totalorder %s438_s30, %s587_s6 }
 0x231   :  { %p444_p3 = pnand %p442_p2, %p439_p1 }
 0x233   :  { %447 = shalt.err (!%p444_p3)
}
 0x234   :  { %272 = dma.vmem_to_hbm [thread:$0]  %s270_s27, 128, %s587_s6, [#allocation6]  }
 0x235   :  { %454 = dma.done.wait [#allocation6], 128  }
 0x236   :  { %455 = vsyncadd [#allocation6], 4294967168 }
 0x237   :  { %276 = vsyncpa [#allocation5], 1 }
 0x238   :  { %277 = vsyncpa [#allocation8], 1 }
 0x239   :  { %278 = vsyncpa [#allocation6], 1 }

</bundles_post_ra>
